<compile_context>
chip_gen: v6e
topology: v6e:2x2x1
jax: 0.10.0
libtpu: 0.0.40
codegen_flags: <defaults>
</compile_context>

<pallas_src>
import functools
import math

import jax
import jax.numpy as jnp
from jax import lax
from jax.experimental import pallas as pl
from jax.experimental.pallas import tpu as pltpu


# ----------------------------- Pallas kernel ------------------------------ #
def _causconv_kernel(x_ref, halo_ref, w_ref, b_ref, o_ref, *, kh, kw, w, span):
    """One (batch, H-tile) grid step.

    x_ref:    (1, C_in, span)      flat main tile, span = th * w
    halo_ref: (1, 1, C_in, halo)   first (kh-1)*w + kw-1 flat elems of next tile
    w_ref:    (C_out, kh*kw*C_in)  K-folded weights
    b_ref:    (C_out, 1)           bias (f32)
    o_ref:    (1, C_out, span)     flat output tile (trimmed in the wrapper)
    """
    main = x_ref[0]                                           # (C_in, span)
    offs = [dh * w + dw for dh in range(kh) for dw in range(kw)]
    if offs[-1] > 0:
        ext = jnp.concatenate([main, halo_ref[0, 0]], axis=-1)   # (C_in, span+halo)
    else:                                                     # kh == kw == 1
        ext = main
    # K-folded slab: all taps stacked along the contraction dim (static slices,
    # paid once and fed straight into a single MXU matmul).
    if len(offs) > 1:
        slab = jnp.concatenate([ext[:, off:off + span] for off in offs], axis=0)
    else:
        slab = ext[:, :span]
    acc = jnp.dot(w_ref[...], slab, preferred_element_type=jnp.float32)  # (C_out, span)
    acc = acc + b_ref[...]                                    # f32 bias add
    o_ref[0, :, :] = acc.astype(o_ref.dtype)                  # single lane-dense store


# ------------------------------- helpers ----------------------------------- #
def _vmem_capacity_bytes():
    try:
        return int(pltpu.get_tpu_info().vmem_capacity_bytes)
    except Exception:
        return 64 * 1024 * 1024        # conservative default (v7x per-core VMEM)


def _pick_h_tile(h, w, c_in, c_out, kh, kw, in_itemsize, out_itemsize):
    """Largest lane-aligned H tile whose working set fits the VMEM budget."""
    g = 128 // math.gcd(w, 128)        # smallest th with (th * w) % 128 == 0
    # Bytes per output row: double-buffered main input + in-kernel ext/slab
    # temporaries + f32 accumulator + double-buffered output block.
    per_row = w * (in_itemsize * (3 * c_in + kh * kw * c_in)
                   + 4 * c_out + 2 * out_itemsize * c_out)
    budget = _vmem_capacity_bytes() // 2   # leave half for weights/halo/Mosaic scratch
    th = max(budget // max(per_row, 1), g)
    th = min(th, 512)                      # keep several pipeline steps for large H
    th = max((th // g) * g, g)
    h_rounded = -(-h // g) * g
    return int(min(th, h_rounded))


# ------------------------------- wrapper ----------------------------------- #
@functools.partial(jax.jit, static_argnames=("kernel_size", "compute_dtype",
                                              "out_dtype", "h_tile"))
def caus_conv2d(x, weight, bias, kernel_size, compute_dtype=jnp.bfloat16,
                out_dtype=None, h_tile=None):
    """Causal Conv2d forward.

    x:      (N, C_in, H, W)        NCHW (H = time, causal axis)
    weight: (C_out, C_in, kh, kw)  OIHW (PyTorch convention)
    bias:   (C_out,)
    returns (N, C_out, H, W - kw + 1), dtype `out_dtype` (default: x.dtype).
    """
    kh, kw = kernel_size
    pad = kh - 1
    n, c_in, h, w = x.shape
    c_out = weight.shape[0]
    w_out = w - kw + 1
    out_dtype = x.dtype if out_dtype is None else out_dtype
    in_itemsize = jnp.dtype(compute_dtype).itemsize
    out_itemsize = jnp.dtype(out_dtype).itemsize

    th = (_pick_h_tile(h, w, c_in, c_out, kh, kw, in_itemsize, out_itemsize)
          if h_tile is None else int(h_tile))
    nt = pl.cdiv(h, th)
    span = th * w
    if nt > 1:
        assert span % 128 == 0, "h_tile * W must be a multiple of 128 when H is tiled"
    halo_len = pad * w + (kw - 1)
    k_fold = kh * kw * c_in

    # Single prep pass over x: causal top pad + bottom pad (ragged H) + tail pad
    # for the last tap of the last row, all on the flattened (H*W) axis + cast.
    x_flat = jnp.pad(x.reshape(n, c_in, h * w).astype(compute_dtype),
                     ((0, 0), (0, 0), (pad * w, (nt * th - h) * w + (kw - 1))))
    # Tiny per-tile causal halo (first halo_len flat elements of the next tile).
    if halo_len > 0:
        halos = jnp.stack(
            [lax.slice_in_dim(x_flat, (t + 1) * span, (t + 1) * span + halo_len, axis=2)
             for t in range(nt)], axis=1)                     # (N, nT, C_in, halo_len)
    else:
        halos = jnp.zeros((n, nt, c_in, 1), compute_dtype)

    # K-folded weights: K index = (dh*kw + dw)*C_in + c  <-  weight[o, c, dh, dw].
    w_fold = weight.transpose(0, 2, 3, 1).reshape(c_out, k_fold).astype(compute_dtype)
    b_col = bias.astype(jnp.float32).reshape(c_out, 1)

    kernel = functools.partial(_causconv_kernel, kh=kh, kw=kw, w=w, span=span)

    flops = 2 * n * nt * span * c_out * k_fold
    bytes_accessed = (x_flat.size * in_itemsize + halos.size * in_itemsize
                      + w_fold.size * in_itemsize + b_col.size * 4
                      + n * c_out * nt * span * out_itemsize)
    est_vmem = ((3 * c_in * span + k_fold * span + 2 * c_in * max(halo_len, 1)
                 + 2 * k_fold * c_out) * in_itemsize
                + 4 * c_out * span + 2 * c_out * span * out_itemsize + (2 << 20))
    cap = _vmem_capacity_bytes()
    vmem_limit = int(min(0.9 * cap, max(32 * 1024 * 1024, 2 * est_vmem)))

    out_flat = pl.pallas_call(
        kernel,
        out_shape=jax.ShapeDtypeStruct((n, c_out, nt * span), out_dtype),
        grid=(n, nt),
        in_specs=[
            pl.BlockSpec((1, c_in, span), lambda b, t: (b, 0, t)),
            pl.BlockSpec((1, 1, c_in, halos.shape[-1]), lambda b, t: (b, t, 0, 0)),
            pl.BlockSpec((c_out, k_fold), lambda b, t: (0, 0)),   # grid-invariant
            pl.BlockSpec((c_out, 1), lambda b, t: (0, 0)),        # grid-invariant
        ],
        out_specs=pl.BlockSpec((1, c_out, span), lambda b, t: (b, 0, t)),
        compiler_params=pltpu.CompilerParams(
            dimension_semantics=("parallel", "parallel"),
            vmem_limit_bytes=vmem_limit),
        cost_estimate=pl.CostEstimate(flops=flops, transcendentals=0,
                                      bytes_accessed=bytes_accessed),
    )(x_flat, halos, w_fold, b_col)

    # Kernel stores the full-width flat rows lane-densely; trim w -> w_out and
    # the ragged/padded H here in one cheap wrapper slice.
    return out_flat.reshape(n, c_out, nt * th, w)[:, :, :h, :w_out]


# ------------------------------- reference --------------------------------- #
def _reference_caus_conv2d(x, weight, bias, kernel_size, compute_dtype=None):
    """Pure-JAX reference matching the PyTorch module."""
    kh, kw = kernel_size
    pad = kh - 1
    if compute_dtype is not None:
        x = x.astype(compute_dtype)
        weight = weight.astype(compute_dtype)
    y = lax.conv_general_dilated(
        x, weight, window_strides=(1, 1), padding=((pad, pad), (0, 0)),
        dimension_numbers=("NCHW", "OIHW", "NCHW"),
        preferred_element_type=jnp.float32)
    y = y + bias.reshape(1, -1, 1, 1).astype(jnp.float32)
    if pad > 0:   # guard: for kh==1 the PyTorch-style [:-0] slice would be empty
        y = y[:, :, :-pad, :]
    return y


# --------------------------------- main ------------------------------------ #
if __name__ == "__main__":
    key = jax.random.PRNGKey(0)
    k_x, k_w, k_b, k_x2 = jax.random.split(key, 4)

    N, C_IN, C_OUT = 2, 4, 8
    H, W = 16, 16                      # H = time (causal), W = freq
    KERNEL = (3, 3)
    W_OUT = W - KERNEL[1] + 1

    x = jax.random.normal(k_x, (N, C_IN, H, W), dtype=jnp.float32)
    fan_in = C_IN * KERNEL[0] * KERNEL[1]
    weight = jax.random.normal(k_w, (C_OUT, C_IN, *KERNEL),
                               dtype=jnp.float32) / jnp.sqrt(fan_in)
    bias = jax.random.normal(k_b, (C_OUT,), dtype=jnp.float32) * 0.1

    # 1) Strict correctness: f32 streaming path vs f32 reference.
    out_f32 = jax.block_until_ready(
        caus_conv2d(x, weight, bias, kernel_size=KERNEL,
                    compute_dtype=jnp.float32))
    ref_f32 = _reference_caus_conv2d(x, weight, bias, KERNEL)
    assert out_f32.shape == (N, C_OUT, H, W_OUT), out_f32.shape
    assert jnp.allclose(out_f32, ref_f32, rtol=1e-3, atol=1e-3), (
        float(jnp.max(jnp.abs(out_f32 - ref_f32))))

    # 2) Default path: bf16 streaming, f32 MXU accumulation.
    out_bf16 = jax.block_until_ready(
        caus_conv2d(x, weight, bias, kernel_size=KERNEL))
    ref_bf16 = _reference_caus_conv2d(x, weight, bias, KERNEL,
                                      compute_dtype=jnp.bfloat16)
    assert out_bf16.shape == (N, C_OUT, H, W_OUT), out_bf16.shape
    assert jnp.allclose(out_bf16, ref_bf16, rtol=1e-2, atol=1e-2), (
        float(jnp.max(jnp.abs(out_bf16 - ref_bf16))))

    # 3) Multi-tile + ragged H (exercises the halo path and wrapper trims).
    H2 = 40                            # 3 tiles of 16 rows, last one ragged
    x2 = jax.random.normal(k_x2, (1, C_IN, H2, W), dtype=jnp.float32)
    out_mt = jax.block_until_ready(
        caus_conv2d(x2, weight, bias, kernel_size=KERNEL,
                    compute_dtype=jnp.float32, h_tile=16))
    ref_mt = _reference_caus_conv2d(x2, weight, bias, KERNEL)
    assert out_mt.shape == (1, C_OUT, H2, W_OUT), out_mt.shape
    assert jnp.allclose(out_mt, ref_mt, rtol=1e-3, atol=1e-3), (
        float(jnp.max(jnp.abs(out_mt - ref_mt))))

    print("KERNEL_OK")
</pallas_src>

<mosaic_0001>
module attributes {stable_mosaic.version = 11 : i64} {
  func.func @_causconv_kernel(%arg0: i32, %arg1: i32, %arg2: memref<1x4x256xf32, #tpu.memory_space<vmem>>, %arg3: memref<1x1x4x34xf32, #tpu.memory_space<vmem>>, %arg4: memref<8x36xf32, #tpu.memory_space<vmem>>, %arg5: memref<8x1xf32, #tpu.memory_space<vmem>>, %arg6: memref<1x8x256xf32, #tpu.memory_space<vmem>>) attributes {dimension_semantics = [#tpu.dimension_semantics<parallel>, #tpu.dimension_semantics<parallel>], iteration_bounds = array<i64: 2, 1>, scalar_prefetch = 0 : i64, scratch_operands = 0 : i64, tpu.core_type = #tpu.core_type<tc>, window_params = [{transform_indices = @transform_0, window_bounds = array<i64: 1, 4, 256>}, {transform_indices = @transform_1, window_bounds = array<i64: 1, 1, 4, 34>}, {pipeline_mode = #tpu.pipeline_mode<synchronous>, transform_indices = @transform_2, window_bounds = array<i64: 8, 36>}, {pipeline_mode = #tpu.pipeline_mode<synchronous>, transform_indices = @transform_3, window_bounds = array<i64: 8, 1>}, {transform_indices = @transform_4, window_bounds = array<i64: 1, 8, 256>}]} {
    %c0 = arith.constant 0 : index
    %c0_0 = arith.constant 0 : index
    %c0_1 = arith.constant 0 : index
    %0 = vector.load %arg2[%c0, %c0_0, %c0_1] : memref<1x4x256xf32, #tpu.memory_space<vmem>>, vector<1x4x256xf32>
    %1 = vector.shape_cast %0 : vector<1x4x256xf32> to vector<4x256xf32>
    %c0_2 = arith.constant 0 : index
    %c0_3 = arith.constant 0 : index
    %c0_4 = arith.constant 0 : index
    %c0_5 = arith.constant 0 : index
    %2 = vector.load %arg3[%c0_2, %c0_3, %c0_4, %c0_5] : memref<1x1x4x34xf32, #tpu.memory_space<vmem>>, vector<1x1x4x34xf32>
    %3 = vector.shape_cast %2 : vector<1x1x4x34xf32> to vector<4x34xf32>
    %4 = tpu.concatenate %1, %3 in 1 : vector<4x256xf32>, vector<4x34xf32> -> vector<4x290xf32>
    %5 = vector.extract_strided_slice %4 {offsets = [0, 0], sizes = [4, 256], strides = [1, 1]} : vector<4x290xf32> to vector<4x256xf32>
    %6 = vector.extract_strided_slice %4 {offsets = [0, 1], sizes = [4, 256], strides = [1, 1]} : vector<4x290xf32> to vector<4x256xf32>
    %7 = vector.extract_strided_slice %4 {offsets = [0, 2], sizes = [4, 256], strides = [1, 1]} : vector<4x290xf32> to vector<4x256xf32>
    %8 = vector.extract_strided_slice %4 {offsets = [0, 16], sizes = [4, 256], strides = [1, 1]} : vector<4x290xf32> to vector<4x256xf32>
    %9 = vector.extract_strided_slice %4 {offsets = [0, 17], sizes = [4, 256], strides = [1, 1]} : vector<4x290xf32> to vector<4x256xf32>
    %10 = vector.extract_strided_slice %4 {offsets = [0, 18], sizes = [4, 256], strides = [1, 1]} : vector<4x290xf32> to vector<4x256xf32>
    %11 = vector.extract_strided_slice %4 {offsets = [0, 32], sizes = [4, 256], strides = [1, 1]} : vector<4x290xf32> to vector<4x256xf32>
    %12 = vector.extract_strided_slice %4 {offsets = [0, 33], sizes = [4, 256], strides = [1, 1]} : vector<4x290xf32> to vector<4x256xf32>
    %13 = vector.extract_strided_slice %4 {offsets = [0, 34], sizes = [4, 256], strides = [1, 1]} : vector<4x290xf32> to vector<4x256xf32>
    %14 = tpu.concatenate %5, %6, %7, %8, %9, %10, %11, %12, %13 in 0 : vector<4x256xf32>, vector<4x256xf32>, vector<4x256xf32>, vector<4x256xf32>, vector<4x256xf32>, vector<4x256xf32>, vector<4x256xf32>, vector<4x256xf32>, vector<4x256xf32> -> vector<36x256xf32>
    %c0_6 = arith.constant 0 : index
    %c0_7 = arith.constant 0 : index
    %15 = vector.load %arg4[%c0_6, %c0_7] : memref<8x36xf32, #tpu.memory_space<vmem>>, vector<8x36xf32>
    %cst = arith.constant dense<0.000000e+00> : vector<8x256xf32>
    %16 = tpu.matmul %15, %14, %cst {dimension_numbers = #tpu.dot_dimension_numbers<[1], [0], [0], [1], [0, 0, 1, 1], [], []>} : vector<8x36xf32>, vector<36x256xf32>, vector<8x256xf32> -> vector<8x256xf32>
    %c0_8 = arith.constant 0 : index
    %c0_9 = arith.constant 0 : index
    %17 = vector.load %arg5[%c0_8, %c0_9] : memref<8x1xf32, #tpu.memory_space<vmem>>, vector<8x1xf32>
    %18 = vector.broadcast %17 : vector<8x1xf32> to vector<8x256xf32>
    %19 = arith.addf %16, %18 : vector<8x256xf32>
    %c0_10 = arith.constant 0 : index
    %c0_11 = arith.constant 0 : index
    %c0_12 = arith.constant 0 : index
    %20 = vector.load %arg6[%c0_10, %c0_11, %c0_12] : memref<1x8x256xf32, #tpu.memory_space<vmem>>, vector<1x8x256xf32>
    %21 = vector.shape_cast %20 : vector<1x8x256xf32> to vector<8x256xf32>
    %22 = vector.shape_cast %19 : vector<8x256xf32> to vector<1x8x256xf32>
    tpu.vector_store %arg6[%c0_10, %c0_11, %c0_12], %22 {strides = array<i32>} : memref<1x8x256xf32, #tpu.memory_space<vmem>>, vector<1x8x256xf32>,
    return
  }
  func.func @transform_0(%arg0: i32, %arg1: i32) -> (i32, i32, i32) {
    %c0_i32 = arith.constant 0 : i32
    %c0_i32_0 = arith.constant 0 : i32
    return %arg0, %c0_i32, %arg1 : i32, i32, i32
  }
  func.func @transform_1(%arg0: i32, %arg1: i32) -> (i32, i32, i32, i32) {
    %c0_i32 = arith.constant 0 : i32
    %c0_i32_0 = arith.constant 0 : i32
    %c0_i32_1 = arith.constant 0 : i32
    return %arg0, %arg1, %c0_i32, %c0_i32_0 : i32, i32, i32, i32
  }
  func.func @transform_2(%arg0: i32, %arg1: i32) -> (i32, i32) {
    %c0_i32 = arith.constant 0 : i32
    %c0_i32_0 = arith.constant 0 : i32
    %c0_i32_1 = arith.constant 0 : i32
    return %c0_i32, %c0_i32_0 : i32, i32
  }
  func.func @transform_3(%arg0: i32, %arg1: i32) -> (i32, i32) {
    %c0_i32 = arith.constant 0 : i32
    %c0_i32_0 = arith.constant 0 : i32
    %c0_i32_1 = arith.constant 0 : i32
    return %c0_i32, %c0_i32_0 : i32, i32
  }
  func.func @transform_4(%arg0: i32, %arg1: i32) -> (i32, i32, i32) {
    %c0_i32 = arith.constant 0 : i32
    %c0_i32_0 = arith.constant 0 : i32
    return %arg0, %c0_i32, %arg1 : i32, i32, i32
  }
}

</mosaic_0001>

<bundles_post_ra>
// kernel: caus_conv2d.1
= control target key start
LH: loop header
LB: loop body
LE: loop exit
PB: predicated region body
PF: predicated region fallthrough
CT: control target
= control target key end

     0   :  { %s690_s15 = smov 0   ;;  %s692_s16 = smov 0   ;;  %s768_s0 = inlined_call_operand.vmem [shape: f32[2,4,290], index: 0, kind: input, shape index: {}]   ;;  %s769_s1 = inlined_call_operand.vmem [shape: f32[2,1,4,34], index: 1, kind: input, shape index: {}]   ;;  %s770_s2 = inlined_call_operand.vmem [shape: f32[8,36], index: 2, kind: input, shape index: {}]   ;;  %s771_s3 = inlined_call_operand.vmem [shape: f32[8,1], index: 3, kind: input, shape index: {}]   ;;  %s772_s4 = inlined_call_operand.vmem [shape: f32[2,8,256], index: 4, kind: output, shape index: {}]  }
   0x1   :  { %s694_s17 = smov 0  }
   0x2 LB: > { %s26_s18 = sadd.s32 1, %s649_s16  ;;  %p583_p0 = scmp.ge.s32.totalorder %s653_s17, 1  ;;  %s653_s17 = sphi %s694_s17, %s14_s17   ;;  %s649_s16 = sphi %s692_s16, %s774_s16   ;;  %s645_s15 = sphi %s690_s15, %s773_s15  }
   0x3   : > { %p28_p1 = scmp.ge.s32.totalorder %s26_s18, 2  ;;  %p205_p2 = scmp.lt.s32.totalorder %s653_s17, 3 }
   0x5   : > { %s776_s18 = smov (%p28_p1, %s26_s18), 0  ;;  %p206_p3 = pnand %p583_p0, %p205_p2 }
   0x6   : > { %p255_p4 = scmp.lt.s32.totalorder (!%p206_p3), %s645_s15, 1  ;;  %s655_s27 = smov (!%p206_p3), 96  }
   0x7   : > { %209 = sbr.rel (%p206_p3) target bundleno = 377 (0x179), region = 36  ;;  %s656_s28 = smov (!%p206_p3), 94  }
   0x8   : > { %s657_s29 = smov (!%p206_p3), 95   ;;  %s658_s30 = smov (!%p206_p3), 111  }
   0x9   : > { %s659_s5 = smov (!%p206_p3), 110   ;;  %s660_s6 = smov (!%p206_p3), 126  }
   0xa   : > { %s661_s7 = smov (!%p206_p3), 112   ;;  %s664_s8 = smov (!%p206_p3), 127  }
   0xc   : > { %s778_s15 = smov (!%p255_p4, %s645_s15), 1  ;;  %v662_v5 = vmov 0.0   ;;  %v663_v6 = vmov 0   ;;  %v390_v7 = vld [vmem:[%s771_s3] sm:$0xff]  ;;  %vm377_vm0 = vcmask 769024   ;;  %vm380_vm1 = vcmask 1043456  }
   0xd   : > { %s585_s19 = sshll.u32 %s778_s15, 2  ;;  %s594_s20 = smul.u32 12, %s778_s15  ;;  %468 = vmatprep.mubr.f32.mxu0 %v662_v5  ;;  %629 = vset.pattern.permute.xlu0 %v663_v6  ;;  %vm355_vm2 = vcmask 785408   ;;  %vm366_vm3 = vcmask 777216   ;;  %vm333_vm4 = vcmask 908288   ;;  %vm344_vm5 = vcmask 900096  }
   0xe   : > { %s274_s23 = scalar_lea.vmem %s769_s1, %s585_s19  ;;  %vm311_vm6 = vcmask 1031168   ;;  %vm322_vm7 = vcmask 916480   ;;  %vm300_vm8 = vcmask 1039360   ;;  %v389_v56 = vld [vmem:[%s770_s2] sm:$0xff]  ;;  %vm396_vm9 = vcmask 293888   ;;  %s593_s13 = sshll.u32 %s778_s15, 4 }
   0xf   : > { %v286_v0 = vld [vmem:[%s274_s23] sm:$0xf]  ;;  %s262_s26 = scalar_lea.vmem %s768_s0, %s594_s20  ;;  %s283_s20 = scalar_lea.vmem %s772_s4, %s593_s13 }
  0x10   : > { %353 = vrot.lane.b32.xlu1 %v286_v0, %s655_s27  ;;  %v718_v1 = vld [vmem:[%s262_s26] sm:$0xff]  ;;  %375 = vrot.lane.b32.xlu0 %v286_v0, %s656_s28  ;;  %v293_v2 = vrot.slane %v286_v0, 4 }
  0x11   : > { %v722_v3 = vcombine.high %v718_v1, %v718_v1  ;;  %v291_v4 = vrot.slane %v718_v1, 4 }
  0x14   : > { %364 = vrot.lane.b32.xlu1 %v293_v2, %s657_s29  ;;  %373 = vrot.lane.b32.xlu0 %v722_v3, %s656_s28 }
  0x18   : > { %351 = vrot.lane.b32.xlu1 %v722_v3, %s655_s27  ;;  %362 = vrot.lane.b32.xlu0 %v722_v3, %s657_s29 }
  0x1c   : > { %349 = vrot.lane.b32.xlu1 %v718_v1, %s655_s27  ;;  %371 = vrot.lane.b32.xlu0 %v718_v1, %s656_s28 }
  0x20   : > { %329 = vrot.lane.b32.xlu1 %v722_v3, %s658_s30  ;;  %360 = vrot.lane.b32.xlu0 %v291_v4, %s657_s29 }
  0x24   : > { %340 = vrot.lane.b32.xlu1 %v722_v3, %s659_s5  ;;  %331 = vrot.lane.b32.xlu0 %v286_v0, %s658_s30 }
  0x28   : > { %327 = vrot.lane.b32.xlu1 %v718_v1, %s658_s30  ;;  %342 = vrot.lane.b32.xlu0 %v293_v2, %s659_s5 }
  0x2c   : > { %307 = vrot.lane.b32.xlu1 %v722_v3, %s660_s6  ;;  %338 = vrot.lane.b32.xlu0 %v291_v4, %s659_s5 }
  0x30   : > { %318 = vrot.lane.b32.xlu1 %v722_v3, %s661_s7  ;;  %309 = vrot.lane.b32.xlu0 %v286_v0, %s660_s6 }
  0x34   : > { %305 = vrot.lane.b32.xlu1 %v718_v1, %s660_s6  ;;  %320 = vrot.lane.b32.xlu0 %v293_v2, %s661_s7 }
  0x38   : > { %296 = vrot.lane.b32.xlu1 %v722_v3, %s664_s8  ;;  %316 = vrot.lane.b32.xlu0 %v291_v4, %s661_s7 }
  0x3c   : > { %294 = vrot.lane.b32.xlu1 %v291_v4, %s664_s8  ;;  %298 = vrot.lane.b32.xlu0 %v293_v2, %s664_s8 }
  0x40   : > { %393 = vperm.xlu0 %629, %v390_v7  }
  0x82   : > { %v354_v8 = vpop.permute.xlu1 %353  ;;  %v376_v9 = vpop.permute.xlu0 %375 }
  0x86   : > { %v365_v10 = vpop.permute.xlu1 %364  ;;  %v374_v11 = vpop.permute.xlu0 %373 }
  0x87   : > { %v379_v12 = vsel %vm377_vm0, %v374_v11, %v376_v9 }
  0x88   : > { %588 = vmatprep.subr.msk.mxu0 %vm380_vm1, %v379_v12 }
  0x8a   : > { %v352_v13 = vpop.permute.xlu1 %351  ;;  %v363_v14 = vpop.permute.xlu0 %362 }
  0x8b   : > { %v357_v15 = vsel %vm355_vm2, %v352_v13, %v354_v8  ;;  %v368_v16 = vsel %vm366_vm3, %v363_v14, %v365_v10 }
  0x8c   : > { %v388_v20 = vsel %vm380_vm1, %v357_v15, %v368_v16 }
  0x8e   : > { %v350_v17 = vpop.permute.xlu1 %349  ;;  %v372_v18 = vpop.permute.xlu0 %371 }
  0x8f   : > { %v378_v19 = vsel %vm377_vm0, %v372_v18, %v374_v11  ;;  %v356_v23 = vsel %vm355_vm2, %v350_v17, %v352_v13 }
  0x90   : > { %589 = vmatpush1.msk.msra.mxu0 %vm380_vm1, %v378_v19 }
  0x91   : > { %428 = vmatprep.subr.mxu0 %v388_v20 }
  0x92   : > { %v330_v21 = vpop.permute.xlu1 %329  ;;  %v361_v22 = vpop.permute.xlu0 %360 }
  0x93   : > { %v367_v24 = vsel %vm366_vm3, %v361_v22, %v363_v14 }
  0x94   : > { %v387_v25 = vsel %vm380_vm1, %v356_v23, %v367_v24 }
  0x95   : > { %429 = vmatpush1.msra.mxu0 %v387_v25 }
  0x96   : > { %v341_v26 = vpop.permute.xlu1 %340  ;;  %v332_v27 = vpop.permute.xlu0 %331 }
  0x97   : > { %v335_v30 = vsel %vm333_vm4, %v330_v21, %v332_v27 }
  0x9a   : > { %v328_v28 = vpop.permute.xlu1 %327  ;;  %v343_v29 = vpop.permute.xlu0 %342 }
  0x9b   : > { %v346_v31 = vsel %vm344_vm5, %v341_v26, %v343_v29  ;;  %v334_v35 = vsel %vm333_vm4, %v328_v28, %v330_v21 }
  0x9c   : > { %v386_v32 = vsel %vm380_vm1, %v335_v30, %v346_v31 }
  0x9d   : > { %430 = vmatprep.subr.mxu0 %v386_v32 }
  0x9e   : > { %v308_v33 = vpop.permute.xlu1 %307  ;;  %v339_v34 = vpop.permute.xlu0 %338 }
  0x9f   : > { %v345_v36 = vsel %vm344_vm5, %v339_v34, %v341_v26 }
  0xa0   : > { %v385_v37 = vsel %vm380_vm1, %v334_v35, %v345_v36 }
  0xa1   : > { %431 = vmatpush1.msra.mxu0 %v385_v37 }
  0xa2   : > { %v319_v38 = vpop.permute.xlu1 %318  ;;  %v310_v39 = vpop.permute.xlu0 %309 }
  0xa3   : > { %v313_v42 = vsel %vm311_vm6, %v308_v33, %v310_v39 }
  0xa6   : > { %v306_v40 = vpop.permute.xlu1 %305  ;;  %v321_v41 = vpop.permute.xlu0 %320 }
  0xa7   : > { %v324_v43 = vsel %vm322_vm7, %v319_v38, %v321_v41  ;;  %v312_v47 = vsel %vm311_vm6, %v306_v40, %v308_v33 }
  0xa8   : > { %v384_v44 = vsel %vm380_vm1, %v313_v42, %v324_v43 }
  0xa9   : > { %432 = vmatprep.subr.mxu0 %v384_v44 }
  0xaa   : > { %v297_v45 = vpop.permute.xlu1 %296  ;;  %v317_v46 = vpop.permute.xlu0 %316 }
  0xab   : > { %v323_v48 = vsel %vm322_vm7, %v317_v46, %v319_v38 }
  0xac   : > { %v383_v49 = vsel %vm380_vm1, %v312_v47, %v323_v48 }
  0xad   : > { %433 = vmatpush1.msra.mxu0 %v383_v49 }
  0xae   : > { %v295_v50 = vpop.permute.xlu1 %294  ;;  %v299_v51 = vpop.permute.xlu0 %298 }
  0xaf   : > { %v301_v52 = vsel %vm300_vm8, %v295_v50, %v297_v45  ;;  %v302_v53 = vsel %vm300_vm8, %v297_v45, %v299_v51 }
  0xb0   : > { %v382_v54 = vsel %vm380_vm1, %v722_v3, %v302_v53  ;;  %v381_v55 = vsel %vm380_vm1, %v718_v1, %v301_v52 }
  0xb1   : > { %434 = vmatprep.subr.mxu0 %v382_v54 }
  0xb2   : > { %435 = vmatpush1.msra.mxu0 %v381_v55 }
  0xb3   : > { %590 = vmatmul.mubr.msk.f32.vlgmr.msra.gmra.mxu0 %vm396_vm9, %v389_v56 }
  0xbb   : > { %v394_v57 = vpop.permute.xlu0 %393 }
 0x173   : > { %v470_v58 = vpop.f32.mrf.mxu0 }
 0x174   : > { %v471_v59 = vadd.f32 %v470_v58, %v394_v57 }
 0x175   : > { %v472_v60 = vpop.f32.mrf.mxu0 }
 0x176   : > { %475 = vst [vmem:[%s283_s20] sm:$0xff] %v471_v59  ;;  %v473_v61 = vadd.f32 %v472_v60, %v394_v57 }
 0x178   : > { %476 = vst [vmem:[%s283_s20 + $0x8] sm:$0xff] %v473_v61 }
 0x179 PF: > { %s14_s17 = sadd.s32 1, %s653_s17   ;;  %s773_s15 = smov %s649_s16 }
 0x17a   : > { %p11_p5 = scmp.ge.s32.totalorder %s14_s17, 4   ;;  %s774_s16 = smov %s776_s18 }
 0x17c   :  { %13 = sbr.rel (!%p11_p5) target bundleno = 2 (0x2), region = 69 }

</bundles_post_ra>
